<compile_context>
chip_gen: v7x
topology: tpu7x:2x2x1
jax: 0.10.0
libtpu: 0.0.40
codegen_flags: <defaults>
</compile_context>

<pallas_src>
import functools

import jax
import jax.numpy as jnp
from jax.experimental import pallas as pl
from jax.experimental.pallas import tpu as pltpu


# ----------------------------------------------------------------------------
# Fused Pallas kernel: conv(im2col matmul)+BN+ReLU -> GAP -> backbone stand-in
# -> folded (fc @ out_w) head -> meta MLP -> output.  Everything stays in VMEM.
# ----------------------------------------------------------------------------
def _osic_fused_kernel(patches_ref, tab_ref,
                       conv_w_ref, conv_b_ref,
                       stem_w_ref, stem_b_ref, w_img_ref,
                       m1_w_ref, m1_b_ref,
                       m2_w_ref, m2_b_ref, w_tab_ref,
                       out_b_ref, o_ref, *, n, p):
    f32 = jnp.float32
    bf16 = jnp.bfloat16

    # conv(1->3, k3, s2, p1) as im2col matmul (bf16 operands, f32 accumulate);
    # BN2d folded into w/b; ReLU epilogue in f32.
    fm = jnp.dot(patches_ref[...], conv_w_ref[...], preferred_element_type=f32)
    fm = jnp.maximum(fm + conv_b_ref[...], 0.0)                    # (N*P, 3)

    # Global average pool: reshape + mean over the P (sublane) axis.
    pooled = jnp.mean(fm.reshape(n, p, fm.shape[-1]), axis=1)      # (N, 3)

    # EfficientNet-b0 stand-in feature extractor -> 1536 feats.
    feat = jnp.dot(pooled.astype(bf16), stem_w_ref[...],
                   preferred_element_type=f32)
    feat = jnp.maximum(feat + stem_b_ref[...], 0.0)                # (N, 1536)

    # Folded _fc(1536,500) @ out_w[:500] head: row-vector multiply + lane sum
    # (VPU + XLU; no lane-padded (K,1) MXU column, no (N,500) intermediate).
    img = jnp.sum(feat * w_img_ref[...], axis=-1, keepdims=True)   # (N, 1)

    # Meta MLP (BN1d folded into w/b; Dropout = identity in eval mode).
    t = jnp.dot(tab_ref[...], m1_w_ref[...], preferred_element_type=f32)
    t = jnp.maximum(t + m1_b_ref[...], 0.0)                        # (N, 500)
    t = jnp.dot(t.astype(bf16), m2_w_ref[...], preferred_element_type=f32)
    t = jnp.maximum(t + m2_b_ref[...], 0.0)                        # (N, 250)
    tab_c = jnp.sum(t * w_tab_ref[...], axis=-1, keepdims=True)    # (N, 1)

    # Output head: img contribution + tab contribution + folded bias.
    o_ref[...] = (img + tab_c + out_b_ref[...]).astype(o_ref.dtype)


def _full_spec(shape):
    nd = len(shape)
    return pl.BlockSpec(shape, lambda i, nd=nd: (0,) * nd)


# ----------------------------------------------------------------------------
# Parameters (deterministic, synthetic) + eval-mode folding
# ----------------------------------------------------------------------------
def _linear_init(key, fan_in, fan_out):
    kw, kb = jax.random.split(key)
    w = jax.random.normal(kw, (fan_in, fan_out), jnp.float32) / jnp.sqrt(fan_in)
    b = 0.01 * jax.random.normal(kb, (fan_out,), jnp.float32)
    return w, b


def _bn_init(key, n):
    k1, k2, k3, k4 = jax.random.split(key, 4)
    return dict(
        gamma=1.0 + 0.1 * jax.random.normal(k1, (n,), jnp.float32),
        beta=0.1 * jax.random.normal(k2, (n,), jnp.float32),
        mean=0.1 * jax.random.normal(k3, (n,), jnp.float32),
        var=1.0 + 0.1 * jax.random.uniform(k4, (n,), jnp.float32),
    )


def _fold_bn(p, eps=1e-5):
    scale = p["gamma"] / jnp.sqrt(p["var"] + eps)
    shift = p["beta"] - p["mean"] * scale
    return scale, shift


def init_params(key):
    ks = jax.random.split(key, 10)
    params = {}
    # nn.Conv2d(1, 3, kernel_size=3, padding=1, stride=2) -> weight (9, 3)
    params["conv_w"], params["conv_b"] = _linear_init(ks[0], 9, 3)
    params["bn"] = _bn_init(ks[1], 3)                      # nn.BatchNorm2d(3)
    # EfficientNet backbone stand-in: GAP(3) -> 1536 features
    params["stem_w"], params["stem_b"] = _linear_init(ks[2], 3, 1536)
    # model._fc = nn.Linear(1536, 500)
    params["fc_w"], params["fc_b"] = _linear_init(ks[3], 1536, 500)
    # meta: Linear(4,500)+BN+ReLU+Drop, Linear(500,250)+BN+ReLU+Drop
    params["m1_w"], params["m1_b"] = _linear_init(ks[4], 4, 500)
    params["mbn1"] = _bn_init(ks[5], 500)
    params["m2_w"], params["m2_b"] = _linear_init(ks[6], 500, 250)
    params["mbn2"] = _bn_init(ks[7], 250)
    # output = nn.Linear(500 + 250, 1)
    params["out_w"], params["out_b"] = _linear_init(ks[8], 750, 1)
    return params


def prepare_inference_params(params):
    """Host-side eval-mode folding:
      * BN2d/BN1d folded into the preceding Linear/Conv weights and biases.
      * _fc (1536x500) and the image half of the output Linear folded into a
        single f32 (1,1536) vector (exact: no nonlinearity between them); the
        fc bias contribution is folded into the output bias.
      * Matmul operands cast to bf16 (f32 accumulation inside the kernel);
        biases / epilogue vectors stay f32.
    """
    cs, csh = _fold_bn(params["bn"])
    s1, h1 = _fold_bn(params["mbn1"])
    s2, h2 = _fold_bn(params["mbn2"])

    out_w_img = params["out_w"][:500]                    # (500, 1)
    out_w_tab = params["out_w"][500:]                    # (250, 1)
    w_img_fold = params["fc_w"] @ out_w_img              # (1536, 1), f32 on host
    b_img_fold = params["fc_b"] @ out_w_img              # (1,)

    p = {
        "conv_w": (params["conv_w"] * cs[None, :]).astype(jnp.bfloat16),
        "conv_b": (params["conv_b"] * cs + csh).reshape(1, -1).astype(jnp.float32),
        "stem_w": params["stem_w"].astype(jnp.bfloat16),
        "stem_b": params["stem_b"].reshape(1, -1).astype(jnp.float32),
        "w_img": w_img_fold.reshape(1, -1).astype(jnp.float32),      # (1, 1536)
        "m1_w": (params["m1_w"] * s1[None, :]).astype(jnp.bfloat16),
        "m1_b": (params["m1_b"] * s1 + h1).reshape(1, -1).astype(jnp.float32),
        "m2_w": (params["m2_w"] * s2[None, :]).astype(jnp.bfloat16),
        "m2_b": (params["m2_b"] * s2 + h2).reshape(1, -1).astype(jnp.float32),
        "w_tab": out_w_tab.reshape(1, -1).astype(jnp.float32),       # (1, 250)
        "out_b": (params["out_b"] + b_img_fold).reshape(1, 1).astype(jnp.float32),
    }
    return p


# ----------------------------------------------------------------------------
# Forward pass: tiny host-side im2col + one fused pallas_call
# ----------------------------------------------------------------------------
def osic_forward(p, x, tab):
    # x: (N, 1, H, W) NCHW, tab: (N, 4)
    n, c, h, w = x.shape
    assert c == 1
    ho = (h + 2 - 3) // 2 + 1
    wo = (w + 2 - 3) // 2 + 1
    npx = ho * wo

    # im2col for the stride-2/pad-1 3x3 conv (tiny strided slices in XLA),
    # cast to bf16 to halve the activation DMA bytes.
    xp = jnp.pad(x[:, 0].astype(jnp.float32), ((0, 0), (1, 1), (1, 1)))
    cols = [xp[:, kh:kh + 2 * ho:2, kw:kw + 2 * wo:2]
            for kh in range(3) for kw in range(3)]
    patches = jnp.stack(cols, axis=-1).reshape(n * npx, 9).astype(jnp.bfloat16)

    args = (patches, tab.astype(jnp.bfloat16),
            p["conv_w"], p["conv_b"],
            p["stem_w"], p["stem_b"], p["w_img"],
            p["m1_w"], p["m1_b"], p["m2_w"], p["m2_b"], p["w_tab"],
            p["out_b"])

    flops = (2 * (n * npx * 9 * 3          # conv im2col matmul
                  + n * 3 * 1536           # backbone stand-in
                  + n * 1536               # folded img head (mul + reduce)
                  + n * 4 * 500            # meta layer 1
                  + n * 500 * 250          # meta layer 2
                  + n * 250)               # tab head (mul + reduce)
             + n * npx * 3)                # global average pool
    bytes_accessed = int(sum(int(a.size) * a.dtype.itemsize for a in args)
                         + n * 1 * 4)

    kernel = functools.partial(_osic_fused_kernel, n=n, p=npx)

    # TODO(synk): scaling plan for large images / batches (esp. v7x, 64 MiB
    # VMEM, 2 TCs): tile conv/pool over a spatial grid axis with a pooled
    # accumulator, add a leading "parallel" batch axis, use the lane-dense
    # (9, N*P) patch layout, and set vmem_limit_bytes explicitly.
    return pl.pallas_call(
        kernel,
        grid=(1,),
        in_specs=[_full_spec(a.shape) for a in args],
        out_specs=_full_spec((n, 1)),
        out_shape=jax.ShapeDtypeStruct((n, 1), jnp.float32),
        compiler_params=pltpu.CompilerParams(
            dimension_semantics=("arbitrary",)),
        cost_estimate=pl.CostEstimate(flops=flops, transcendentals=0,
                                      bytes_accessed=bytes_accessed),
    )(*args)


# ----------------------------------------------------------------------------
if __name__ == "__main__":
    key = jax.random.PRNGKey(0)
    pkey, xkey, tkey = jax.random.split(key, 3)

    params = init_params(pkey)
    prepared = prepare_inference_params(params)   # BN + fc/output folds (host)

    x = jax.random.normal(xkey, (2, 1, 16, 16), jnp.float32)  # (N, C=1, H, W)
    tab = jax.random.normal(tkey, (2, 4), jnp.float32)        # (N, 4) tabular

    out = jax.jit(osic_forward)(prepared, x, tab)
    out = jax.block_until_ready(out)
    assert out.shape == (2, 1) and out.dtype == jnp.float32
    print("KERNEL_OK")
</pallas_src>

<mosaic_0001>
module attributes {stable_mosaic.version = 11 : i64} {
  func.func @_osic_fused_kernel(%arg0: i32, %arg1: memref<128x9xbf16, #tpu.memory_space<vmem>>, %arg2: memref<2x4xbf16, #tpu.memory_space<vmem>>, %arg3: memref<9x3xbf16, #tpu.memory_space<vmem>>, %arg4: memref<1x3xf32, #tpu.memory_space<vmem>>, %arg5: memref<3x1536xbf16, #tpu.memory_space<vmem>>, %arg6: memref<1x1536xf32, #tpu.memory_space<vmem>>, %arg7: memref<1x1536xf32, #tpu.memory_space<vmem>>, %arg8: memref<4x500xbf16, #tpu.memory_space<vmem>>, %arg9: memref<1x500xf32, #tpu.memory_space<vmem>>, %arg10: memref<500x250xbf16, #tpu.memory_space<vmem>>, %arg11: memref<1x250xf32, #tpu.memory_space<vmem>>, %arg12: memref<1x250xf32, #tpu.memory_space<vmem>>, %arg13: memref<1x1xf32, #tpu.memory_space<vmem>>, %arg14: memref<2x1xf32, #tpu.memory_space<vmem>>) attributes {dimension_semantics = [#tpu.dimension_semantics<arbitrary>], iteration_bounds = array<i64: 1>, scalar_prefetch = 0 : i64, scratch_operands = 0 : i64, tpu.core_type = #tpu.core_type<tc>, window_params = [{pipeline_mode = #tpu.pipeline_mode<synchronous>, transform_indices = @transform_0, window_bounds = array<i64: 128, 9>}, {pipeline_mode = #tpu.pipeline_mode<synchronous>, transform_indices = @transform_1, window_bounds = array<i64: 2, 4>}, {pipeline_mode = #tpu.pipeline_mode<synchronous>, transform_indices = @transform_2, window_bounds = array<i64: 9, 3>}, {pipeline_mode = #tpu.pipeline_mode<synchronous>, transform_indices = @transform_3, window_bounds = array<i64: 1, 3>}, {pipeline_mode = #tpu.pipeline_mode<synchronous>, transform_indices = @transform_4, window_bounds = array<i64: 3, 1536>}, {pipeline_mode = #tpu.pipeline_mode<synchronous>, transform_indices = @transform_5, window_bounds = array<i64: 1, 1536>}, {pipeline_mode = #tpu.pipeline_mode<synchronous>, transform_indices = @transform_6, window_bounds = array<i64: 1, 1536>}, {pipeline_mode = #tpu.pipeline_mode<synchronous>, transform_indices = @transform_7, window_bounds = array<i64: 4, 500>}, {pipeline_mode = #tpu.pipeline_mode<synchronous>, transform_indices = @transform_8, window_bounds = array<i64: 1, 500>}, {pipeline_mode = #tpu.pipeline_mode<synchronous>, transform_indices = @transform_9, window_bounds = array<i64: 500, 250>}, {pipeline_mode = #tpu.pipeline_mode<synchronous>, transform_indices = @transform_10, window_bounds = array<i64: 1, 250>}, {pipeline_mode = #tpu.pipeline_mode<synchronous>, transform_indices = @transform_11, window_bounds = array<i64: 1, 250>}, {pipeline_mode = #tpu.pipeline_mode<synchronous>, transform_indices = @transform_12, window_bounds = array<i64: 1, 1>}, {pipeline_mode = #tpu.pipeline_mode<synchronous>, transform_indices = @transform_13, window_bounds = array<i64: 2, 1>}]} {
    %c0 = arith.constant 0 : index
    %c0_0 = arith.constant 0 : index
    %0 = vector.load %arg1[%c0, %c0_0] : memref<128x9xbf16, #tpu.memory_space<vmem>>, vector<128x9xbf16>
    %c0_1 = arith.constant 0 : index
    %c0_2 = arith.constant 0 : index
    %1 = vector.load %arg3[%c0_1, %c0_2] : memref<9x3xbf16, #tpu.memory_space<vmem>>, vector<9x3xbf16>
    %cst = arith.constant dense<0.000000e+00> : vector<128x3xf32>
    %2 = tpu.matmul %0, %1, %cst {dimension_numbers = #tpu.dot_dimension_numbers<[1], [0], [0], [1], [0, 0, 1, 1], [], []>} : vector<128x9xbf16>, vector<9x3xbf16>, vector<128x3xf32> -> vector<128x3xf32>
    %c0_3 = arith.constant 0 : index
    %c0_4 = arith.constant 0 : index
    %3 = vector.load %arg4[%c0_3, %c0_4] : memref<1x3xf32, #tpu.memory_space<vmem>>, vector<1x3xf32>
    %4 = vector.broadcast %3 : vector<1x3xf32> to vector<128x3xf32>
    %5 = arith.addf %2, %4 : vector<128x3xf32>
    %cst_5 = arith.constant 0.000000e+00 : f32
    %6 = vector.broadcast %cst_5 : f32 to vector<128x3xf32>
    %7 = arith.maximumf %5, %6 : vector<128x3xf32>
    %8 = vector.shape_cast %7 : vector<128x3xf32> to vector<2x64x3xf32>
    %cst_6 = arith.constant dense<0.000000e+00> : vector<2x3xf32>
    %9 = vector.multi_reduction <add>, %8, %cst_6 [1] : vector<2x64x3xf32> to vector<2x3xf32>
    %cst_7 = arith.constant 6.400000e+01 : f32
    %10 = vector.broadcast %cst_7 : f32 to vector<2x3xf32>
    %11 = arith.divf %9, %10 : vector<2x3xf32>
    %12 = arith.truncf %11 : vector<2x3xf32> to vector<2x3xbf16>
    %c0_8 = arith.constant 0 : index
    %c0_9 = arith.constant 0 : index
    %13 = vector.load %arg5[%c0_8, %c0_9] : memref<3x1536xbf16, #tpu.memory_space<vmem>>, vector<3x1536xbf16>
    %cst_10 = arith.constant dense<0.000000e+00> : vector<2x1536xf32>
    %14 = tpu.matmul %12, %13, %cst_10 {dimension_numbers = #tpu.dot_dimension_numbers<[1], [0], [0], [1], [0, 0, 1, 1], [], []>} : vector<2x3xbf16>, vector<3x1536xbf16>, vector<2x1536xf32> -> vector<2x1536xf32>
    %c0_11 = arith.constant 0 : index
    %c0_12 = arith.constant 0 : index
    %15 = vector.load %arg6[%c0_11, %c0_12] : memref<1x1536xf32, #tpu.memory_space<vmem>>, vector<1x1536xf32>
    %16 = vector.broadcast %15 : vector<1x1536xf32> to vector<2x1536xf32>
    %17 = arith.addf %14, %16 : vector<2x1536xf32>
    %cst_13 = arith.constant 0.000000e+00 : f32
    %18 = vector.broadcast %cst_13 : f32 to vector<2x1536xf32>
    %19 = arith.maximumf %17, %18 : vector<2x1536xf32>
    %c0_14 = arith.constant 0 : index
    %c0_15 = arith.constant 0 : index
    %20 = vector.load %arg7[%c0_14, %c0_15] : memref<1x1536xf32, #tpu.memory_space<vmem>>, vector<1x1536xf32>
    %21 = vector.broadcast %20 : vector<1x1536xf32> to vector<2x1536xf32>
    %22 = arith.mulf %19, %21 : vector<2x1536xf32>
    %cst_16 = arith.constant dense<0.000000e+00> : vector<2xf32>
    %23 = vector.multi_reduction <add>, %22, %cst_16 [1] : vector<2x1536xf32> to vector<2xf32>
    %24 = vector.shape_cast %23 : vector<2xf32> to vector<2x1xf32>
    %c0_17 = arith.constant 0 : index
    %c0_18 = arith.constant 0 : index
    %25 = vector.load %arg2[%c0_17, %c0_18] : memref<2x4xbf16, #tpu.memory_space<vmem>>, vector<2x4xbf16>
    %c0_19 = arith.constant 0 : index
    %c0_20 = arith.constant 0 : index
    %26 = vector.load %arg8[%c0_19, %c0_20] : memref<4x500xbf16, #tpu.memory_space<vmem>>, vector<4x500xbf16>
    %cst_21 = arith.constant dense<0.000000e+00> : vector<2x500xf32>
    %27 = tpu.matmul %25, %26, %cst_21 {dimension_numbers = #tpu.dot_dimension_numbers<[1], [0], [0], [1], [0, 0, 1, 1], [], []>} : vector<2x4xbf16>, vector<4x500xbf16>, vector<2x500xf32> -> vector<2x500xf32>
    %c0_22 = arith.constant 0 : index
    %c0_23 = arith.constant 0 : index
    %28 = vector.load %arg9[%c0_22, %c0_23] : memref<1x500xf32, #tpu.memory_space<vmem>>, vector<1x500xf32>
    %29 = vector.broadcast %28 : vector<1x500xf32> to vector<2x500xf32>
    %30 = arith.addf %27, %29 : vector<2x500xf32>
    %cst_24 = arith.constant 0.000000e+00 : f32
    %31 = vector.broadcast %cst_24 : f32 to vector<2x500xf32>
    %32 = arith.maximumf %30, %31 : vector<2x500xf32>
    %33 = arith.truncf %32 : vector<2x500xf32> to vector<2x500xbf16>
    %c0_25 = arith.constant 0 : index
    %c0_26 = arith.constant 0 : index
    %34 = vector.load %arg10[%c0_25, %c0_26] : memref<500x250xbf16, #tpu.memory_space<vmem>>, vector<500x250xbf16>
    %cst_27 = arith.constant dense<0.000000e+00> : vector<2x250xf32>
    %35 = tpu.matmul %33, %34, %cst_27 {dimension_numbers = #tpu.dot_dimension_numbers<[1], [0], [0], [1], [0, 0, 1, 1], [], []>} : vector<2x500xbf16>, vector<500x250xbf16>, vector<2x250xf32> -> vector<2x250xf32>
    %c0_28 = arith.constant 0 : index
    %c0_29 = arith.constant 0 : index
    %36 = vector.load %arg11[%c0_28, %c0_29] : memref<1x250xf32, #tpu.memory_space<vmem>>, vector<1x250xf32>
    %37 = vector.broadcast %36 : vector<1x250xf32> to vector<2x250xf32>
    %38 = arith.addf %35, %37 : vector<2x250xf32>
    %cst_30 = arith.constant 0.000000e+00 : f32
    %39 = vector.broadcast %cst_30 : f32 to vector<2x250xf32>
    %40 = arith.maximumf %38, %39 : vector<2x250xf32>
    %c0_31 = arith.constant 0 : index
    %c0_32 = arith.constant 0 : index
    %41 = vector.load %arg12[%c0_31, %c0_32] : memref<1x250xf32, #tpu.memory_space<vmem>>, vector<1x250xf32>
    %42 = vector.broadcast %41 : vector<1x250xf32> to vector<2x250xf32>
    %43 = arith.mulf %40, %42 : vector<2x250xf32>
    %cst_33 = arith.constant dense<0.000000e+00> : vector<2xf32>
    %44 = vector.multi_reduction <add>, %43, %cst_33 [1] : vector<2x250xf32> to vector<2xf32>
    %45 = vector.shape_cast %44 : vector<2xf32> to vector<2x1xf32>
    %46 = arith.addf %24, %45 : vector<2x1xf32>
    %c0_34 = arith.constant 0 : index
    %c0_35 = arith.constant 0 : index
    %47 = vector.load %arg13[%c0_34, %c0_35] : memref<1x1xf32, #tpu.memory_space<vmem>>, vector<1x1xf32>
    %48 = vector.broadcast %47 : vector<1x1xf32> to vector<2x1xf32>
    %49 = arith.addf %46, %48 : vector<2x1xf32>
    %c0_36 = arith.constant 0 : index
    %c0_37 = arith.constant 0 : index
    %50 = vector.load %arg14[%c0_36, %c0_37] : memref<2x1xf32, #tpu.memory_space<vmem>>, vector<2x1xf32>
    tpu.vector_store %arg14[%c0_36, %c0_37], %49 {strides = array<i32>} : memref<2x1xf32, #tpu.memory_space<vmem>>, vector<2x1xf32>,
    return
  }
  func.func @transform_0(%arg0: i32) -> (i32, i32) {
    %c0_i32 = arith.constant 0 : i32
    %c0_i32_0 = arith.constant 0 : i32
    %c0_i32_1 = arith.constant 0 : i32
    return %c0_i32, %c0_i32_0 : i32, i32
  }
  func.func @transform_1(%arg0: i32) -> (i32, i32) {
    %c0_i32 = arith.constant 0 : i32
    %c0_i32_0 = arith.constant 0 : i32
    %c0_i32_1 = arith.constant 0 : i32
    return %c0_i32, %c0_i32_0 : i32, i32
  }
  func.func @transform_2(%arg0: i32) -> (i32, i32) {
    %c0_i32 = arith.constant 0 : i32
    %c0_i32_0 = arith.constant 0 : i32
    %c0_i32_1 = arith.constant 0 : i32
    return %c0_i32, %c0_i32_0 : i32, i32
  }
  func.func @transform_3(%arg0: i32) -> (i32, i32) {
    %c0_i32 = arith.constant 0 : i32
    %c0_i32_0 = arith.constant 0 : i32
    %c0_i32_1 = arith.constant 0 : i32
    return %c0_i32, %c0_i32_0 : i32, i32
  }
  func.func @transform_4(%arg0: i32) -> (i32, i32) {
    %c0_i32 = arith.constant 0 : i32
    %c0_i32_0 = arith.constant 0 : i32
    %c0_i32_1 = arith.constant 0 : i32
    return %c0_i32, %c0_i32_0 : i32, i32
  }
  func.func @transform_5(%arg0: i32) -> (i32, i32) {
    %c0_i32 = arith.constant 0 : i32
    %c0_i32_0 = arith.constant 0 : i32
    %c0_i32_1 = arith.constant 0 : i32
    return %c0_i32, %c0_i32_0 : i32, i32
  }
  func.func @transform_6(%arg0: i32) -> (i32, i32) {
    %c0_i32 = arith.constant 0 : i32
    %c0_i32_0 = arith.constant 0 : i32
    %c0_i32_1 = arith.constant 0 : i32
    return %c0_i32, %c0_i32_0 : i32, i32
  }
  func.func @transform_7(%arg0: i32) -> (i32, i32) {
    %c0_i32 = arith.constant 0 : i32
    %c0_i32_0 = arith.constant 0 : i32
    %c0_i32_1 = arith.constant 0 : i32
    return %c0_i32, %c0_i32_0 : i32, i32
  }
  func.func @transform_8(%arg0: i32) -> (i32, i32) {
    %c0_i32 = arith.constant 0 : i32
    %c0_i32_0 = arith.constant 0 : i32
    %c0_i32_1 = arith.constant 0 : i32
    return %c0_i32, %c0_i32_0 : i32, i32
  }
  func.func @transform_9(%arg0: i32) -> (i32, i32) {
    %c0_i32 = arith.constant 0 : i32
    %c0_i32_0 = arith.constant 0 : i32
    %c0_i32_1 = arith.constant 0 : i32
    return %c0_i32, %c0_i32_0 : i32, i32
  }
  func.func @transform_10(%arg0: i32) -> (i32, i32) {
    %c0_i32 = arith.constant 0 : i32
    %c0_i32_0 = arith.constant 0 : i32
    %c0_i32_1 = arith.constant 0 : i32
    return %c0_i32, %c0_i32_0 : i32, i32
  }
  func.func @transform_11(%arg0: i32) -> (i32, i32) {
    %c0_i32 = arith.constant 0 : i32
    %c0_i32_0 = arith.constant 0 : i32
    %c0_i32_1 = arith.constant 0 : i32
    return %c0_i32, %c0_i32_0 : i32, i32
  }
  func.func @transform_12(%arg0: i32) -> (i32, i32) {
    %c0_i32 = arith.constant 0 : i32
    %c0_i32_0 = arith.constant 0 : i32
    %c0_i32_1 = arith.constant 0 : i32
    return %c0_i32, %c0_i32_0 : i32, i32
  }
  func.func @transform_13(%arg0: i32) -> (i32, i32) {
    %c0_i32 = arith.constant 0 : i32
    %c0_i32_0 = arith.constant 0 : i32
    %c0_i32_1 = arith.constant 0 : i32
    return %c0_i32, %c0_i32_0 : i32, i32
  }
}

</mosaic_0001>

<bundles_post_ra>
// kernel: osic_forward.1
= control target key start
LH: loop header
LB: loop body
LE: loop exit
PB: predicated region body
PF: predicated region fallthrough
CT: control target
= control target key end

     0   :  { %s2164_s0 = inlined_call_operand.vmem [shape: bf16[128,9], index: 0, kind: input, shape index: {}]   ;;  %s2165_s1 = inlined_call_operand.vmem [shape: bf16[2,4], index: 1, kind: input, shape index: {}]   ;;  %s2166_s2 = inlined_call_operand.vmem [shape: bf16[9,3], index: 2, kind: input, shape index: {}]   ;;  %s2167_s3 = inlined_call_operand.vmem [shape: f32[1,3], index: 3, kind: input, shape index: {}]   ;;  %s2168_s4 = inlined_call_operand.vmem [shape: bf16[3,1536], index: 4, kind: input, shape index: {}]   ;;  %s2169_s5 = inlined_call_operand.vmem [shape: f32[1,1536], index: 5, kind: input, shape index: {}]   ;;  %s2170_s6 = inlined_call_operand.vmem [shape: f32[1,1536], index: 6, kind: input, shape index: {}]   ;;  %s2171_s7 = inlined_call_operand.vmem [shape: bf16[4,500], index: 7, kind: input, shape index: {}]   ;;  %s2172_s8 = inlined_call_operand.vmem [shape: f32[1,500], index: 8, kind: input, shape index: {}]   ;;  %s2173_s9 = inlined_call_operand.hbm [shape: bf16[500,250], index: 9, kind: input, shape index: {}]   ;;  %s2174_s10 = inlined_call_operand.vmem [shape: f32[1,250], index: 10, kind: input, shape index: {}]   ;;  %s2175_s11 = inlined_call_operand.vmem [shape: f32[1,250], index: 11, kind: input, shape index: {}]   ;;  %s2176_s12 = inlined_call_operand.<no memory space> [shape: f32[1,1], index: 12, kind: input, shape index: {}]   ;;  %s2177_s13 = inlined_call_operand.vmem [shape: f32[2,1], index: 13, kind: output, shape index: {}]  }
   0x1   :  { %v18_v0 = vstv %s2176_s12 }
   0x2   :  { %19 = vst [vmem:[#allocation2] sm:$0x1] %v18_v0 }
   0x3   :  { %20 = vsyncpa [#allocation4], 0  ;;  %s1786_s27 = smov [#allocation3]   ;;  %s1762_s14 = scalar_lea.hbm %s2173_s9, 8064 }
   0x4   :  { %s44_s28 = sshll.u32 %s1786_s27, 4  ;;  %p1763_p0 = scmp.ne.s32.totalorder %s2173_s9, %s1762_s14  ;;  %s45_s28 = int_to_ptr.vmem [resolvable:$true] %s44_s28 }
   0x5   :  { %p1766_p1 = scmp.lt.u32.totalorder %s1762_s14, %s2173_s9 }
   0x7   :  { %p1768_p2 = pnand %p1766_p1, %p1763_p0 }
   0x9   :  { %1771 = shalt.err (!%p1768_p2)
}
   0xa   :  { %s1772_s12 = scalar_lea.vmem %s45_s28, 8064  ;;  %p1777_p4 = scmp.lt.s32.totalorder %s45_s28, %s45_s28 }
   0xb   :  { %p1773_p3 = scmp.ne.s32.totalorder %s45_s28, %s1772_s12  ;;  %p1778_p5 = scmp.lt.s32.totalorder %s1772_s12, %s1772_s12 }
   0xd   :  { %p1779_p6 = por %p1778_p5, %p1777_p4 }
   0xf   :  { %p1780_p7 = pnand %p1779_p6, %p1773_p3 }
  0x11   :  { %1783 = shalt.err (!%p1780_p7)
}
  0x12   :  { %s1787_s19 = smov 128   ;;  %s1788_s20 = smov 8  }
  0x13   :  { %50 = dma.hbm_to_vmem [thread:$0]  %s2173_s9, 8064, %s45_s28, [#allocation4], %s1787_s19, %s1787_s19, %s1788_s20  }
  0x14   :  { %1784 = dma.done.wait [#allocation4], 8064  }
  0x15   :  { %1785 = vsyncadd [#allocation4], 4294959232  ;;  %vm156_vm0 = vcmask 1043456   ;;  %vm157_vm1 = vcmask 1044480   ;;  %v1789_v1 = vmov 65535   ;;  %vm131_vm2 = vcmask 72704  }
  0x16   :  { %v158_v2 = vsel %vm156_vm0, 4294967295, %v1789_v1  ;;  %v1654_v4 = vld [vmem:[%s2166_s2] sm:$0x1f]   ;;  %v1656_v7 = vld [vmem:[%s2164_s0 + $0x8] sm:$0xff]   ;;  %v1657_v8 = vld [vmem:[%s2164_s0 + $0x10] sm:$0xff]   ;;  %v331_v14 = vlaneseq  ;;  %vm455_vm3 = vcmask 1040384  }
  0x17   :  { %v159_v3 = vsel %vm157_vm1, %v158_v2, 0  ;;  %v1655_v5 = vld [vmem:[%s2164_s0] sm:$0xff]   ;;  %v1658_v9 = vld [vmem:[%s2164_s0 + $0x18] sm:$0xff]   ;;  %v1660_v11 = vld [vmem:[%s2164_s0 + $0x28] sm:$0xff]   ;;  %v1790_v15 = vmov 1983009808  }
  0x18   :  { %v161_v6 = vand.u32 %v1654_v4, %v159_v3  ;;  %1628 = vmatprep.mubr.msk.bf16.mxu0 %vm131_vm2, %v1655_v5  ;;  %v1659_v10 = vld [vmem:[%s2164_s0 + $0x20] sm:$0xff]   ;;  %v1661_v12 = vld [vmem:[%s2164_s0 + $0x30] sm:$0xff]   ;;  %v1662_v13 = vld [vmem:[%s2164_s0 + $0x38] sm:$0xff]   ;;  %v403_v16 = vunpack.c.l.s4 %v1790_v15  ;;  %v1912_v17 = vshrl.u32 %v331_v14, 7  ;;  %vm456_vm4 = vcmask 1041408  }
  0x19   :  { %v457_v19 = vsel %vm455_vm3, 4294967295, %v1789_v1  ;;  %v324_v21 = vld [vmem:[%s2168_s4] sm:$0xff]  ;;  %v326_v22 = vld [vmem:[%s2168_s4 + $0x10] sm:$0xff]  ;;  %v1791_v34 = vmov 0   ;;  %v325_v38 = vld [vmem:[%s2168_s4 + $0x8] sm:$0xff]  ;;  %vm276_vm5 = vcmask 23552  }
  0x1a   :  { %1626 = vmatprep.subr.bf16.mxu0 %v161_v6  ;;  %v404_v18 = vunpack.c.0.s8 %v403_v16  ;;  %v1922_v25 = vsel %vm456_vm4, %v457_v19, 0  ;;  %v401_v30 = vcombine.high %v324_v21, %v324_v21  ;;  %527 = vmatprep.mubr.bf16.mxu1 %v1791_v34  ;;  %v418_v43 = vcombine.high %v325_v38, %v325_v38  ;;  %v855_v53 = vld [vmem:[%s2171_s7] sm:$0xff] }
  0x1b   :  { %1627 = vmatpush3.bf16.msra.mxu0 %v161_v6  ;;  %v435_v48 = vcombine.high %v326_v22, %v326_v22  ;;  %v879_v55 = vcombine.high %v855_v53, %v855_v53  ;;  %v1980_v58 = vld [vmem:[%s2167_s3] ss:$0 sm:$0xff]  ;;  %vm395_vm6 = vcmask 1041409   ;;  %vm896_vm7 = vcmask 31744  }
  0x1c   :  { %v407_v20 = vsub.s32 %v404_v18, %v1912_v17  ;;  %vm1392_vm8 = vcmask 949248   ;;  %vm1501_vm9 = vcmask 992256   ;;  %vm1515_vm10 = vcmask 1024  }
  0x1e   :  { %1629 = vmatmul.mubr.msk.bf16.vlgmr.msra.gmra.mrb[0].mxu0 %vm131_vm2, %v1656_v7  ;;  %v408_v23 = vrot.slane %v324_v21, %v407_v20  ;;  %v442_v24 = vrot.slane %v326_v22, %v407_v20  ;;  %v1928_v33 = vrot.slane %v401_v30, %v407_v20  ;;  %v1940_v39 = vrot.slane %v325_v38, %v407_v20 }
  0x1f   :  { %1632 = vmatprep.mubr.msk.bf16.mxu0 %vm131_vm2, %v1657_v8  ;;  %v1949_v44 = vrot.slane %v418_v43, %v407_v20  ;;  %v1958_v49 = vrot.slane %v435_v48, %v407_v20  ;;  %v1970_v54 = vrot.slane %v855_v53, %v407_v20  ;;  %v1974_v57 = vrot.slane %v879_v55, %v407_v20 }
  0x20   :  { %v416_v26 = vcombine.high %v408_v23, %v408_v23  ;;  %v450_v27 = vcombine.high %v442_v24, %v442_v24  ;;  %v460_v31 = vand.u32 %v1922_v25, %v408_v23  ;;  %v484_v32 = vand.u32 %v1922_v25, %v442_v24 }
  0x21   :  { %v417_v35 = vcombine.high %v1928_v33, %v1928_v33  ;;  %v466_v36 = vand.u32 %v1922_v25, %v1928_v33  ;;  %v433_v40 = vcombine.high %v1940_v39, %v1940_v39  ;;  %v472_v42 = vand.u32 %v1922_v25, %v1940_v39  ;;  %v1679_v33 = vld [vmem:[#allocation3 + $0x110] ss:$8 sps:$4 sm:$0xff]  }
  0x22   :  { %v463_v28 = vand.u32 %v1922_v25, %v416_v26  ;;  %v487_v29 = vand.u32 %v1922_v25, %v450_v27  ;;  %v434_v45 = vcombine.high %v1949_v44, %v1949_v44  ;;  %v478_v47 = vand.u32 %v1922_v25, %v1949_v44  ;;  %v1691_v39 = vld [vmem:[#allocation3 + $0x130] ss:$8 sps:$4 sm:$0xff]  }
  0x23   :  { %v469_v37 = vand.u32 %v1922_v25, %v417_v35  ;;  %v1945_v41 = vand.u32 %v1922_v25, %v433_v40  ;;  %v451_v50 = vcombine.high %v1958_v49, %v1958_v49  ;;  %v490_v52 = vand.u32 %v1922_v25, %v1958_v49  ;;  %v1678_v49 = vld [vmem:[#allocation3 + $0x24] ss:$8 sps:$4 sm:$0xff]  }
  0x24   :  { %495 = vmatprep.subr.bf16.mxu1 %v463_v28  ;;  %659 = vmatprep.subr.bf16.mxu0 %v487_v29  ;;  %v1954_v46 = vand.u32 %v1922_v25, %v434_v45  ;;  %v894_v56 = vcombine.high %v1970_v54, %v1970_v54  ;;  %v907_v44 = vsel %vm456_vm4, %v1974_v57, 0 }
  0x25   :  { %496 = vmatpush1.bf16.msra.mxu1 %v460_v31  ;;  %660 = vmatpush1.bf16.msra.mxu0 %v484_v32  ;;  %v1963_v51 = vand.u32 %v1922_v25, %v451_v50  ;;  %v1670_v25 = vld [vmem:[#allocation3 + $0x10] ss:$8 sps:$4 sm:$0xff]  }
  0x26   :  { %1633 = vmatmul.mubr.msk.bf16.gmra.mrb[4].mxu0 %vm131_vm2, %v1658_v9  ;;  %536 = vmatprep.subr.bf16.mxu1 %v469_v37 }
  0x27   :  { %1636 = vmatprep.mubr.msk.bf16.mxu0 %vm131_vm2, %v1659_v10  ;;  %1546 = vmatprep.subr.msk.bf16.mxu0 %vm456_vm4, %v894_v56 }
  0x2e   :  { %1637 = vmatmul.mubr.msk.bf16.gmra.mrb[8].mxu0 %vm131_vm2, %v1660_v11 }
  0x2f   :  { %1640 = vmatprep.mubr.msk.bf16.mxu0 %vm131_vm2, %v1661_v12 }
  0x36   :  { %1641 = vmatmul.mubr.msk.bf16.gmra.mrb[12].mxu0 %vm131_vm2, %v1662_v13 }
  0x37   :  { %691 = vmatprep.mubr.bf16.mxu0 %v1791_v34 }
  0xf1   :  { %v1630_v59 = vpop.f32.mrb[0].mxu0 }
  0xf2   :  { %v197_v60 = vpop.f32.mrb[1].mxu0  ;;  %v206_v61 = vadd.f32 %v1630_v59, %v1980_v58 }
  0xf3   :  { %v198_v62 = vadd.f32 %v1980_v58, %v197_v60  ;;  %v1631_v63 = vpop.f32.mrb[2].mxu0 }
  0xf4   :  { %v200_v0 = vpop.f32.mrb[3].mxu0  ;;  %v209_v2 = vadd.f32 %v1631_v63, %v1980_v58  ;;  %v262_v4 = vmax.f32 %v206_v61, 0.0 }
  0xf5   :  { %v260_v1 = vmax.f32 %v198_v62, 0.0  ;;  %v201_v3 = vadd.f32 %v1980_v58, %v200_v0 }
  0xf6   :  { %v263_v7 = vmax.f32 %v209_v2, 0.0  ;;  %v280_v12 = vsel %vm276_vm5, %v262_v4, 0.0 }
  0xf7   :  { %v261_v5 = vmax.f32 %v201_v3, 0.0  ;;  %v277_v6 = vsel %vm276_vm5, %v260_v1, 0.0 }
  0xf8   :  { %v282_v19 = vsel %vm276_vm5, %v263_v7, 0.0 }
  0xf9   :  { %v278_v8 = vsel %vm276_vm5, %v261_v5, 0.0  ;;  %v1634_v9 = vpop.f32.mrb[4].mxu0 }
  0xfa   :  { %v279_v10 = vadd.f32 %v278_v8, %v277_v6  ;;  %v213_v11 = vpop.f32.mrb[5].mxu0  ;;  %v222_v13 = vadd.f32 %v1634_v9, %v1980_v58 }
  0xfb   :  { %v214_v14 = vadd.f32 %v1980_v58, %v213_v11  ;;  %v1635_v15 = vpop.f32.mrb[6].mxu0 }
  0xfc   :  { %v281_v16 = vadd.f32 %v280_v12, %v279_v10  ;;  %v216_v18 = vpop.f32.mrb[7].mxu0  ;;  %v225_v21 = vadd.f32 %v1635_v15, %v1980_v58  ;;  %v266_v24 = vmax.f32 %v222_v13, 0.0 }
  0xfd   :  { %v264_v20 = vmax.f32 %v214_v14, 0.0  ;;  %v217_v22 = vadd.f32 %v1980_v58, %v216_v18 }
  0xfe   :  { %v283_v23 = vadd.f32 %v282_v19, %v281_v16  ;;  %v267_v29 = vmax.f32 %v225_v21, 0.0  ;;  %v288_v37 = vsel %vm276_vm5, %v266_v24, 0.0 }
  0xff   :  { %v284_v26 = vsel %vm276_vm5, %v264_v20, 0.0  ;;  %v265_v27 = vmax.f32 %v217_v22, 0.0 }
 0x100   :  { %v285_v28 = vadd.f32 %v284_v26, %v283_v23  ;;  %v290_v50 = vsel %vm276_vm5, %v267_v29, 0.0 }
 0x101   :  { %v286_v30 = vsel %vm276_vm5, %v265_v27, 0.0  ;;  %v1638_v31 = vpop.f32.mrb[8].mxu0 }
 0x102   :  { %v287_v32 = vadd.f32 %v286_v30, %v285_v28  ;;  %v229_v35 = vpop.f32.mrb[9].mxu0  ;;  %v238_v38 = vadd.f32 %v1638_v31, %v1980_v58 }
 0x103   :  { %v230_v40 = vadd.f32 %v1980_v58, %v229_v35  ;;  %v1639_v43 = vpop.f32.mrb[10].mxu0 }
 0x104   :  { %v289_v45 = vadd.f32 %v288_v37, %v287_v32  ;;  %v232_v48 = vpop.f32.mrb[11].mxu0  ;;  %v241_v55 = vadd.f32 %v1639_v43, %v1980_v58  ;;  %v270_v60 = vmax.f32 %v238_v38, 0.0 }
 0x105   :  { %v268_v53 = vmax.f32 %v230_v40, 0.0  ;;  %v233_v56 = vadd.f32 %v1980_v58, %v232_v48 }
 0x106   :  { %v291_v59 = vadd.f32 %v290_v50, %v289_v45  ;;  %v271_v0 = vmax.f32 %v241_v55, 0.0  ;;  %v301_v5 = vsel %vm276_vm5, %v270_v60, 0.0 }
 0x107   :  { %v269_v61 = vmax.f32 %v233_v56, 0.0  ;;  %v298_v63 = vsel %vm276_vm5, %v268_v53, 0.0 }
 0x108   :  { %v292_v62 = vrot.slane %v291_v59, 4  ;;  %v303_v12 = vsel %vm276_vm5, %v271_v0, 0.0  ;;  %v1673_v0 = vld [vmem:[#allocation3 + $0x100] ss:$8 sps:$4 sm:$0xff]  }
 0x109   :  { %v299_v1 = vsel %vm276_vm5, %v269_v61, 0.0  ;;  %v1642_v2 = vpop.f32.mrb[12].mxu0 }
 0x10a   :  { %v300_v3 = vadd.f32 %v299_v1, %v298_v63  ;;  %v245_v4 = vpop.f32.mrb[13].mxu0  ;;  %v254_v6 = vadd.f32 %v1642_v2, %v1980_v58  ;;  %v293_v9 = vadd.f32 %v292_v62, %v291_v59  ;;  %v901_v62 = vsel %vm456_vm4, %v1970_v54, 0  ;;  %v1675_v63 = vld [vmem:[#allocation3 + $0x104] ss:$8 sps:$4 sm:$0xff]   ;;  %v854_v54 = vld [vmem:[%s2165_s1] sm:$0x1] }
 0x10b   :  { %v246_v7 = vadd.f32 %v1980_v58, %v245_v4  ;;  %v1643_v8 = vpop.f32.mrb[14].mxu0  ;;  %v1681_v1 = vld [vmem:[#allocation3 + $0x114] ss:$8 sps:$4 sm:$0xff]   ;;  %v1690_v4 = vld [vmem:[#allocation3 + $0x44] ss:$8 sps:$4 sm:$0xff]  }
 0x10c   :  { %v302_v10 = vadd.f32 %v301_v5, %v300_v3  ;;  %v248_v11 = vpop.f32.mrb[15].mxu0  ;;  %v257_v14 = vadd.f32 %v1643_v8, %v1980_v58  ;;  %v274_v18 = vmax.f32 %v254_v6, 0.0  ;;  %v294_v21 = vrot.slane %v293_v9, 2  ;;  %v1693_v2 = vld [vmem:[#allocation3 + $0x134] ss:$8 sps:$4 sm:$0xff]  }
 0x10d   :  { %v272_v13 = vmax.f32 %v246_v7, 0.0  ;;  %v249_v15 = vadd.f32 %v1980_v58, %v248_v11  ;;  %v1684_v3 = vld [vmem:[#allocation3 + $0x34] ss:$8 sps:$4 sm:$0xff]   ;;  %v1688_v5 = vld [vmem:[#allocation3 + $0x40] ss:$8 sps:$4 sm:$0xff]  }
 0x10e   :  { %v304_v16 = vadd.f32 %v303_v12, %v302_v10  ;;  %v275_v23 = vmax.f32 %v257_v14, 0.0  ;;  %v309_v27 = vsel %vm276_vm5, %v274_v18, 0.0  ;;  %v295_v28 = vadd.f32 %v294_v21, %v293_v9  ;;  %v1694_v6 = vld [vmem:[#allocation3 + $0x50] ss:$8 sps:$4 sm:$0xff]   ;;  %v1699_v7 = vld [vmem:[#allocation3 + $0x144] ss:$8 sps:$4 sm:$0xff]  }
 0x10f   :  { %v305_v19 = vsel %vm276_vm5, %v272_v13, 0.0  ;;  %v273_v20 = vmax.f32 %v249_v15, 0.0  ;;  %v1697_v8 = vld [vmem:[#allocation3 + $0x140] ss:$8 sps:$4 sm:$0xff]   ;;  %v1702_v9 = vld [vmem:[#allocation3 + $0x64] ss:$8 sps:$4 sm:$0xff]  }
 0x110   :  { %v306_v22 = vadd.f32 %v305_v19, %v304_v16  ;;  %v311_v30 = vsel %vm276_vm5, %v275_v23, 0.0  ;;  %v296_v32 = vrot.slane %v295_v28, 1  ;;  %v1700_v10 = vld [vmem:[#allocation3 + $0x60] ss:$8 sps:$4 sm:$0xff]   ;;  %v1705_v11 = vld [vmem:[#allocation3 + $0x154] ss:$8 sps:$4 sm:$0xff]  }
 0x111   :  { %v307_v24 = vsel %vm276_vm5, %v273_v20, 0.0  ;;  %v1703_v12 = vld [vmem:[#allocation3 + $0x150] ss:$8 sps:$4 sm:$0xff]   ;;  %v1708_v13 = vld [vmem:[#allocation3 + $0x74] ss:$8 sps:$4 sm:$0xff]  }
 0x112   :  { %v308_v26 = vadd.f32 %v307_v24, %v306_v22  ;;  %v297_v37 = vadd.f32 %v296_v32, %v295_v28  ;;  %v1706_v14 = vld [vmem:[#allocation3 + $0x70] ss:$8 sps:$4 sm:$0xff]   ;;  %v1711_v15 = vld [vmem:[#allocation3 + $0x164] ss:$8 sps:$4 sm:$0xff]   ;;  %v1709_v16 = vld [vmem:[#allocation3 + $0x160] ss:$8 sps:$4 sm:$0xff]  }
 0x113   :  { %v1714_v18 = vld [vmem:[#allocation3 + $0x84] ss:$8 sps:$4 sm:$0xff]   ;;  %v1712_v19 = vld [vmem:[#allocation3 + $0x80] ss:$8 sps:$4 sm:$0xff]   ;;  %v1717_v20 = vld [vmem:[#allocation3 + $0x174] ss:$8 sps:$4 sm:$0xff]  }
 0x114   :  { %v310_v29 = vadd.f32 %v309_v27, %v308_v26  ;;  %v320_v43 = vmul.f32 0.015625, %v297_v37  ;;  %v1715_v21 = vld [vmem:[#allocation3 + $0x170] ss:$8 sps:$4 sm:$0xff]   ;;  %v1720_v22 = vld [vmem:[#allocation3 + $0x94] ss:$8 sps:$4 sm:$0xff]  }
 0x115   :  { %v1718_v23 = vld [vmem:[#allocation3 + $0x90] ss:$8 sps:$4 sm:$0xff]   ;;  %v1723_v24 = vld [vmem:[#allocation3 + $0x184] ss:$8 sps:$4 sm:$0xff]   ;;  %v1721_v26 = vld [vmem:[#allocation3 + $0x180] ss:$8 sps:$4 sm:$0xff]  }
 0x116   :  { %v312_v31 = vadd.f32 %v311_v30, %v310_v29  ;;  %v322_v50 = vpack.c.bf16 %v320_v43, %v320_v43  ;;  %v1726_v27 = vld [vmem:[#allocation3 + $0xa4] ss:$8 sps:$4 sm:$0xff]   ;;  %v1724_v28 = vld [vmem:[#allocation3 + $0xa0] ss:$8 sps:$4 sm:$0xff]   ;;  %v1729_v29 = vld [vmem:[#allocation3 + $0x194] ss:$8 sps:$4 sm:$0xff]  }
 0x117   :  { %v1727_v30 = vld [vmem:[#allocation3 + $0x190] ss:$8 sps:$4 sm:$0xff]   ;;  %v1738_v37 = vld [vmem:[#allocation3 + $0xc4] ss:$8 sps:$4 sm:$0xff]  }
 0x118   :  { %v313_v58 = vrot.slane %v312_v31, 4  ;;  %v393_v56 = vunpack.c.l.b16 %v322_v50  ;;  %v1730_v32 = vld [vmem:[#allocation3 + $0xb0] ss:$8 sps:$4 sm:$0xff]   ;;  %v1747_v50 = vld [vmem:[#allocation3 + $0x1c4] ss:$8 sps:$4 sm:$0xff]  }
 0x119   :  { %v1739_v43 = vld [vmem:[#allocation3 + $0x1b0] ss:$8 sps:$4 sm:$0xff]  }
 0x11a   :  { %v314_v35 = vadd.f32 %v313_v58, %v312_v31  ;;  %v1732_v31 = vld [vmem:[#allocation3 + $0xb4] ss:$8 sps:$4 sm:$0xff]   ;;  %v1735_v58 = vld [vmem:[#allocation3 + $0x1a4] ss:$8 sps:$4 sm:$0xff]  }
 0x11c   :  { %v315_v38 = vrot.slane %v314_v35, 2 }
 0x11e   :  { %v316_v40 = vadd.f32 %v315_v38, %v314_v35  ;;  %v1733_v35 = vld [vmem:[#allocation3 + $0x1a0] ss:$8 sps:$4 sm:$0xff]  }
 0x11f   :  { %v1736_v38 = vld [vmem:[#allocation3 + $0xc0] ss:$8 sps:$4 sm:$0xff]  }
 0x120   :  { %v317_v45 = vrot.slane %v316_v40, 1 }
 0x122   :  { %v318_v48 = vadd.f32 %v317_v45, %v316_v40  ;;  %v1741_v40 = vld [vmem:[#allocation3 + $0x1b4] ss:$8 sps:$4 sm:$0xff]  }
 0x123   :  { %v1744_v45 = vld [vmem:[#allocation3 + $0xd4] ss:$8 sps:$4 sm:$0xff]  }
 0x124   :  { %v321_v53 = vmul.f32 0.015625, %v318_v48  ;;  %v1742_v48 = vld [vmem:[#allocation3 + $0xd0] ss:$8 sps:$4 sm:$0xff]  }
 0x126   :  { %v323_v55 = vpack.c.bf16 %v321_v53, %v321_v53  ;;  %v1745_v53 = vld [vmem:[#allocation3 + $0x1c0] ss:$8 sps:$4 sm:$0xff]  }
 0x128   :  { %v394_v59 = vunpack.c.l.b16 %v323_v55  ;;  %v1750_v55 = vld [vmem:[#allocation3 + $0xe4] ss:$8 sps:$4 sm:$0xff]  }
 0x12a   :  { %v396_v60 = vsel %vm395_vm6, %v394_v59, %v393_v56  ;;  %v1748_v56 = vld [vmem:[#allocation3 + $0xe0] ss:$8 sps:$4 sm:$0xff]   ;;  %v1753_v59 = vld [vmem:[#allocation3 + $0x1d4] ss:$8 sps:$4 sm:$0xff]  }
 0x12b   :  { %v397_v61 = vpack.c.b16 %v396_v60, %v396_v60  ;;  %v1751_v60 = vld [vmem:[#allocation3 + $0x1d0] ss:$8 sps:$4 sm:$0xff]  }
 0x12d   :  { %1540 = vmatmul.mubr.msk.bf16.vlgmr.msra.gmra.mrb[0].mxu1 %vm276_vm5, %v397_v61  ;;  %1544 = vmatmul.mubr.msk.bf16.vlgmr.msra.gmra.mrb[16].mxu0 %vm276_vm5, %v397_v61 }
 0x12e   :  { %537 = vmatpush1.bf16.msra.mxu1 %v466_v36  ;;  %568 = vmatprep.mubr.bf16.mxu1 %v1791_v34  ;;  %v1687_v36 = vld [vmem:[#allocation3 + $0x124] ss:$8 sps:$4 sm:$0xff]  }
 0x12f   :  { %577 = vmatprep.subr.bf16.mxu1 %v1945_v41  ;;  %913 = vmatpush1.bf16.msra.mxu0 %v901_v62  ;;  %v1685_v41 = vld [vmem:[#allocation3 + $0x120] ss:$8 sps:$4 sm:$0xff]   ;;  %v1754_v62 = vld [vmem:[#allocation3 + $0xf0] ss:$8 sps:$4 sm:$0xff]  }
 0x130   :  { %944 = vmatprep.mubr.bf16.mxu0 %v1791_v34  ;;  %1443 = vmatprep.subr.bf16.mxu0 %v1675_v63  ;;  %v1759_v63 = vld [vmem:[#allocation3 + $0x1e4] ss:$8 sps:$4 sm:$0xff]  }
 0x135   :  { %1541 = vmatmul.mubr.msk.bf16.vlgmr.msra.gmra.mrb[4].mxu1 %vm276_vm5, %v397_v61  ;;  %1547 = vmatmul.mubr.msk.bf16.vlgmr.msra.gmra.mrb[20].mxu0 %vm896_vm7, %v854_v54 }
 0x136   :  { %578 = vmatpush1.bf16.msra.mxu1 %v472_v42  ;;  %609 = vmatprep.mubr.bf16.mxu1 %v1791_v34  ;;  %v895_v42 = vcombine.high %v1974_v57, %v1974_v57  ;;  %v1682_v57 = vld [vmem:[#allocation3 + $0x30] ss:$8 sps:$4 sm:$0xff]  }
 0x137   :  { %618 = vmatprep.subr.bf16.mxu1 %v1954_v46  ;;  %1444 = vmatpush1.bf16.msra.mxu0 %v1673_v0  ;;  %v1669_v46 = vld [vmem:[#allocation3 + $0x4] ss:$8 sps:$4 sm:$0xff]   ;;  %v1064_v0 = vld [vmem:[#allocation3 + $0x1f0] sm:$0x33] }
 0x138   :  { %1445 = vmatprep.subr.bf16.mxu0 %v1681_v1  ;;  %v1613_v1 = vcombine.high %v1064_v0, %v1064_v0 }
 0x13b   :  { %1446 = vmatpush1.bf16.msra.mxu0 %v1679_v33  ;;  %v1612_v33 = vcombine.low %v1064_v0, %v1064_v0  ;;  %v328_v0 = vld [vmem:[%s2169_s5 + $0x8] sm:$0xf] }
 0x13c   :  { %1447 = vmatprep.subr.bf16.mxu0 %v1687_v36 }
 0x13d   :  { %1542 = vmatmul.mubr.msk.bf16.vlgmr.msra.gmra.mrb[8].mxu1 %vm276_vm5, %v397_v61  ;;  %v1397_v36 = vsel %vm456_vm4, %v1612_v33, 0 }
 0x13e   :  { %619 = vmatpush1.bf16.msra.mxu1 %v478_v47  ;;  %650 = vmatprep.mubr.bf16.mxu1 %v1791_v34  ;;  %v1667_v47 = vld [vmem:[#allocation3] ss:$8 sps:$4 sm:$0xff]  }
 0x13f   :  { %700 = vmatprep.subr.bf16.mxu1 %v1963_v51  ;;  %1448 = vmatpush1.bf16.msra.mxu0 %v1685_v41  ;;  %v1672_v51 = vld [vmem:[#allocation3 + $0x14] ss:$8 sps:$4 sm:$0xff]   ;;  %v2056_v41 = vsub.s32 0, %v1912_v17 }
 0x140   :  { %1449 = vmatprep.subr.bf16.mxu0 %v1693_v2  ;;  %v2061_v2 = vld [vmem:[%s2169_s5] sm:$0xff] }
 0x143   :  { %1450 = vmatpush1.bf16.msra.mxu0 %v1691_v39  ;;  %v2064_v39 = vsub.s32 1, %v1912_v17 }
 0x144   :  { %1451 = vmatprep.subr.bf16.mxu0 %v1699_v7  ;;  %v2087_v7 = vsub.s32 3, %v1912_v17 }
 0x145   :  { %1543 = vmatmul.mubr.msk.bf16.vlgmr.msra.gmra.mrb[12].mxu1 %vm276_vm5, %v397_v61 }
 0x146   :  { %701 = vmatpush1.bf16.msra.mxu1 %v490_v52  ;;  %732 = vmatprep.mubr.bf16.mxu1 %v1791_v34  ;;  %v1676_v52 = vld [vmem:[#allocation3 + $0x20] ss:$8 sps:$4 sm:$0xff]  }
 0x147   :  { %1548 = vmatprep.subr.msk.bf16.mxu1 %vm456_vm4, %v895_v42  ;;  %1452 = vmatpush1.bf16.msra.mxu0 %v1697_v8  ;;  %v334_v42 = vrot.slane %v2061_v2, %v2056_v41  ;;  %v2092_v8 = vld [vmem:[%s2172_s8] sm:$0xf] }
 0x148   :  { %1453 = vmatprep.subr.bf16.mxu0 %v1705_v11 }
 0x14b   :  { %1454 = vmatpush1.bf16.msra.mxu0 %v1703_v12 }
 0x14c   :  { %1455 = vmatprep.subr.bf16.mxu0 %v1711_v15  ;;  %v861_v15 = vrot.slane %v2092_v8, %v2056_v41 }
 0x14d   :  { %1545 = vmatmul.mubr.msk.bf16.vlgmr.msra.gmra.mrb[16].mxu1 %vm276_vm5, %v397_v61  ;;  %v1756_v61 = vld [vmem:[#allocation3 + $0xf4] ss:$8 sps:$4 sm:$0xff]  }
 0x14e   :  { %954 = vmatpush1.bf16.msra.mxu1 %v907_v44  ;;  %985 = vmatprep.mubr.bf16.mxu1 %v1791_v34  ;;  %v1696_v34 = vld [vmem:[#allocation3 + $0x54] ss:$8 sps:$4 sm:$0xff]  }
 0x14f   :  { %1402 = vmatprep.subr.bf16.mxu1 %v1669_v46  ;;  %1456 = vmatpush1.bf16.msra.mxu0 %v1709_v16  ;;  %v2071_v44 = vld [vmem:[%s2170_s6] sm:$0xff]  ;;  %v338_v46 = vrot.slane %v2061_v2, %v2064_v39 }
 0x150   :  { %1457 = vmatprep.subr.bf16.mxu0 %v1717_v20 }
 0x153   :  { %1458 = vmatpush1.bf16.msra.mxu0 %v1715_v21 }
 0x154   :  { %1459 = vmatprep.subr.bf16.mxu0 %v1723_v24 }
 0x155   :  { %1549 = vmatmul.mubr.msk.bf16.vlgmr.msra.gmra.mrb[20].mxu1 %vm896_vm7, %v854_v54  ;;  %v1757_v54 = vld [vmem:[#allocation3 + $0x1e0] ss:$8 sps:$4 sm:$0xff]  }
 0x156   :  { %1403 = vmatpush1.bf16.msra.mxu1 %v1667_v47 }
 0x157   :  { %1404 = vmatprep.subr.bf16.mxu1 %v1672_v51  ;;  %1460 = vmatpush1.bf16.msra.mxu0 %v1721_v26 }
 0x158   :  { %1461 = vmatprep.subr.bf16.mxu0 %v1729_v29  ;;  %v349_v29 = vsub.s32 4, %v1912_v17 }
 0x15a   :  { %1405 = vmatpush1.bf16.msra.mxu1 %v1670_v25 }
 0x15b   :  { %1406 = vmatprep.subr.bf16.mxu1 %v1678_v49  ;;  %1462 = vmatpush1.bf16.msra.mxu0 %v1727_v30  ;;  %v760_v49 = vrot.slane %v2071_v44, %v2056_v41 }
 0x15c   :  { %1463 = vmatprep.subr.bf16.mxu0 %v1735_v58  ;;  %v772_v58 = vrot.slane %v2071_v44, %v2087_v7 }
 0x15e   :  { %1407 = vmatpush1.bf16.msra.mxu1 %v1676_v52 }
 0x15f   :  { %1408 = vmatprep.subr.bf16.mxu1 %v1684_v3  ;;  %1464 = vmatpush1.bf16.msra.mxu0 %v1733_v35 }
 0x160   :  { %1465 = vmatprep.subr.bf16.mxu0 %v1741_v40 }
 0x162   :  { %1409 = vmatpush1.bf16.msra.mxu1 %v1682_v57  ;;  %v2082_v57 = vsub.s32 2, %v1912_v17 }
 0x163   :  { %1410 = vmatprep.subr.bf16.mxu1 %v1690_v4  ;;  %1466 = vmatpush1.bf16.msra.mxu0 %v1739_v43 }
 0x164   :  { %1467 = vmatprep.subr.bf16.mxu0 %v1747_v50 }
 0x166   :  { %1411 = vmatpush1.bf16.msra.mxu1 %v1688_v5  ;;  %v764_v5 = vrot.slane %v2071_v44, %v2064_v39 }
 0x167   :  { %1412 = vmatprep.subr.bf16.mxu1 %v1696_v34  ;;  %1468 = vmatpush1.bf16.msra.mxu0 %v1745_v53 }
 0x168   :  { %1469 = vmatprep.subr.bf16.mxu0 %v1753_v59  ;;  %v350_v59 = vrot.slane %v2061_v2, %v349_v29 }
 0x16a   :  { %1413 = vmatpush1.bf16.msra.mxu1 %v1694_v6 }
 0x16b   :  { %1414 = vmatprep.subr.bf16.mxu1 %v1702_v9  ;;  %1470 = vmatpush1.bf16.msra.mxu0 %v1751_v60 }
 0x16c   :  { %1471 = vmatprep.subr.bf16.mxu0 %v1759_v63 }
 0x16e   :  { %1415 = vmatpush1.bf16.msra.mxu1 %v1700_v10 }
 0x16f   :  { %1416 = vmatprep.subr.bf16.mxu1 %v1708_v13  ;;  %1472 = vmatpush1.bf16.msra.mxu0 %v1757_v54 }
 0x170   :  { %1614 = vmatprep.subr.msk.bf16.mxu0 %vm456_vm4, %v1613_v1 }
 0x172   :  { %1417 = vmatpush1.bf16.msra.mxu1 %v1706_v14  ;;  %v342_v14 = vrot.slane %v2061_v2, %v2082_v57 }
 0x173   :  { %1418 = vmatprep.subr.bf16.mxu1 %v1714_v18  ;;  %1474 = vmatpush1.bf16.msra.mxu0 %v1397_v36  ;;  %v346_v18 = vrot.slane %v2061_v2, %v2087_v7 }
 0x176   :  { %1419 = vmatpush1.bf16.msra.mxu1 %v1712_v19  ;;  %v865_v19 = vrot.slane %v2092_v8, %v2064_v39 }
 0x177   :  { %1420 = vmatprep.subr.bf16.mxu1 %v1720_v22 }
 0x17a   :  { %1421 = vmatpush1.bf16.msra.mxu1 %v1718_v23  ;;  %v768_v23 = vrot.slane %v2071_v44, %v2082_v57 }
 0x17b   :  { %1422 = vmatprep.subr.bf16.mxu1 %v1726_v27 }
 0x17e   :  { %1423 = vmatpush1.bf16.msra.mxu1 %v1724_v28 }
 0x17f   :  { %1424 = vmatprep.subr.bf16.mxu1 %v1732_v31 }
 0x182   :  { %1425 = vmatpush1.bf16.msra.mxu1 %v1730_v32 }
 0x183   :  { %1426 = vmatprep.subr.bf16.mxu1 %v1738_v37  ;;  %v353_v37 = vsub.s32 5, %v1912_v17 }
 0x186   :  { %1427 = vmatpush1.bf16.msra.mxu1 %v1736_v38 }
 0x187   :  { %1428 = vmatprep.subr.bf16.mxu1 %v1744_v45 }
 0x18a   :  { %1429 = vmatpush1.bf16.msra.mxu1 %v1742_v48 }
 0x18b   :  { %1430 = vmatprep.subr.bf16.mxu1 %v1750_v55 }
 0x18e   :  { %1431 = vmatpush1.bf16.msra.mxu1 %v1748_v56 }
 0x18f   :  { %1432 = vmatprep.subr.bf16.mxu1 %v1756_v61 }
 0x192   :  { %1433 = vmatpush1.bf16.msra.mxu1 %v1754_v62  ;;  %v354_v62 = vrot.slane %v2061_v2, %v353_v37 }
 0x200   :  { %v529_v47 = vpop.f32.mrb[0].mxu1  ;;  %v2075_v51 = vpop.f32.mrb[16].mxu0 }
 0x201   :  { %v530_v25 = vadd.f32 %v529_v47, %v334_v42  ;;  %v531_v52 = vpop.f32.mrb[1].mxu1  ;;  %v2079_v3 = vpop.f32.mrb[17].mxu0 }
 0x202   :  { %v532_v4 = vadd.f32 %v531_v52, %v338_v46  ;;  %v533_v34 = vpop.f32.mrb[2].mxu1  ;;  %v697_v6 = vpop.f32.mrb[18].mxu0  ;;  %v776_v46 = vrot.slane %v2071_v44, %v349_v29 }
 0x203   :  { %v741_v9 = vmax.f32 %v530_v25, 0.0  ;;  %v534_v10 = vpop.f32.mrb[3].mxu1  ;;  %v698_v11 = vpop.f32.mrb[19].mxu0  ;;  %v357_v25 = vsub.s32 6, %v1912_v17  ;;  %v361_v34 = vsub.s32 7, %v1912_v17  ;;  %v366_v6 = vrot.slane %v328_v0, %v2056_v41 }
 0x204   :  { %v742_v12 = vmax.f32 %v532_v4, 0.0  ;;  %v780_v4 = vrot.slane %v2071_v44, %v353_v37  ;;  %v754_v17 = vld [vmem:[%s2170_s6 + $0x8] sm:$0xf] }
 0x205   :  { %v817_v13 = vmul.f32 %v760_v49, %v741_v9 }
 0x206   :  { %v818_v16 = vmul.f32 %v764_v5, %v742_v12  ;;  %v370_v12 = vrot.slane %v328_v0, %v2064_v39 }
 0x207   :  { %v829_v20 = vsel %vm456_vm4, %v817_v13, 0.0 }
 0x208   :  { %v830_v21 = vsel %vm456_vm4, %v818_v16, 0.0  ;;  %v570_v22 = vpop.f32.mrb[4].mxu1  ;;  %v946_v24 = vpop.f32.mrb[20].mxu0  ;;  %v362_v16 = vrot.slane %v2061_v2, %v361_v34 }
 0x209   :  { %v831_v26 = vadd.f32 %v830_v21, %v829_v20  ;;  %v571_v27 = vadd.f32 %v570_v22, %v342_v14  ;;  %v572_v28 = vpop.f32.mrb[5].mxu1  ;;  %v947_v30 = vadd.f32 %v946_v24, %v861_v15  ;;  %v948_v31 = vpop.f32.mrb[21].mxu0  ;;  %v358_v14 = vrot.slane %v2061_v2, %v357_v25 }
 0x20a   :  { %v573_v32 = vadd.f32 %v572_v28, %v346_v18  ;;  %v574_v35 = vpop.f32.mrb[6].mxu1  ;;  %v949_v38 = vadd.f32 %v948_v31, %v865_v19  ;;  %v950_v40 = vpop.f32.mrb[22].mxu0  ;;  %v694_v18 = vadd.f32 %v2075_v51, %v366_v6  ;;  %v788_v51 = vrot.slane %v2071_v44, %v361_v34 }
 0x20b   :  { %v743_v43 = vmax.f32 %v571_v27, 0.0  ;;  %v575_v45 = vpop.f32.mrb[7].mxu1  ;;  %v994_v48 = vmax.f32 %v947_v30, 0.0  ;;  %v951_v50 = vpop.f32.mrb[23].mxu0  ;;  %v792_v31 = vrot.slane %v754_v17, %v2056_v41 }
 0x20c   :  { %v744_v53 = vmax.f32 %v573_v32, 0.0  ;;  %v995_v55 = vmax.f32 %v949_v38, 0.0  ;;  %v749_v30 = vmax.f32 %v694_v18, 0.0  ;;  %v796_v38 = vrot.slane %v754_v17, %v2064_v39 }
 0x20d   :  { %v819_v56 = vmul.f32 %v768_v23, %v743_v43  ;;  %v998_v60 = vpack.c.bf16 %v994_v48, %v994_v48  ;;  %v696_v23 = vadd.f32 %v2079_v3, %v370_v12  ;;  %v374_v3 = vrot.slane %v328_v0, %v2082_v57 }
 0x20e   :  { %v820_v61 = vmul.f32 %v772_v58, %v744_v53  ;;  %v999_v63 = vpack.c.bf16 %v995_v55, %v995_v55  ;;  %v378_v45 = vrot.slane %v328_v0, %v2087_v7  ;;  %v825_v48 = vmul.f32 %v792_v31, %v749_v30 }
 0x20f   :  { %v832_v54 = vsel %vm456_vm4, %v819_v56, 0.0  ;;  %v750_v37 = vmax.f32 %v696_v23, 0.0 }
 0x210   :  { %v833_v1 = vadd.f32 %v832_v54, %v831_v26  ;;  %v834_v33 = vsel %vm456_vm4, %v820_v61, 0.0  ;;  %v611_v36 = vpop.f32.mrb[8].mxu1  ;;  %1434 = vmatprep.mubr.bf16.mxu1 %v999_v63  ;;  %v784_v26 = vrot.slane %v2071_v44, %v357_v25  ;;  %v869_v25 = vrot.slane %v2092_v8, %v2082_v57 }
 0x211   :  { %v612_v42 = vadd.f32 %v611_v36, %v350_v59  ;;  %v613_v47 = vpop.f32.mrb[9].mxu1  ;;  %1435 = vmatmul.mubr.bf16.vlgmr.msra.gmra.mrb[24].mxu1 %v998_v60  ;;  %v826_v56 = vmul.f32 %v796_v38, %v750_v37  ;;  %v800_v60 = vrot.slane %v754_v17, %v2082_v57 }
 0x212   :  { %v835_v49 = vadd.f32 %v834_v33, %v833_v1  ;;  %v614_v52 = vadd.f32 %v613_v47, %v354_v62  ;;  %v615_v5 = vpop.f32.mrb[10].mxu1  ;;  %v804_v1 = vrot.slane %v754_v17, %v2087_v7  ;;  %v844_v33 = vsel %vm456_vm4, %v825_v48, 0.0 }
 0x213   :  { %v745_v9 = vmax.f32 %v612_v42, 0.0  ;;  %v616_v10 = vpop.f32.mrb[11].mxu1 }
 0x214   :  { %v746_v11 = vmax.f32 %v614_v52, 0.0  ;;  %v873_v52 = vrot.slane %v2092_v8, %v2087_v7 }
 0x215   :  { %v821_v13 = vmul.f32 %v776_v46, %v745_v9 }
 0x216   :  { %v822_v15 = vmul.f32 %v780_v4, %v746_v11 }
 0x217   :  { %v836_v19 = vsel %vm456_vm4, %v821_v13, 0.0 }
 0x218   :  { %v837_v20 = vadd.f32 %v836_v19, %v835_v49  ;;  %v838_v21 = vsel %vm456_vm4, %v822_v15, 0.0  ;;  %v652_v22 = vpop.f32.mrb[12].mxu1  ;;  %v846_v49 = vsel %vm456_vm4, %v826_v56, 0.0 }
 0x219   :  { %v653_v24 = vadd.f32 %v652_v22, %v358_v14  ;;  %v654_v27 = vpop.f32.mrb[13].mxu1  ;;  %v1065_v22 = vld [vmem:[%s2174_s10] sm:$0x3] }
 0x21a   :  { %v839_v28 = vadd.f32 %v838_v21, %v837_v20  ;;  %v655_v2 = vadd.f32 %v654_v27, %v362_v16  ;;  %v656_v29 = vpop.f32.mrb[14].mxu1  ;;  %v1070_v23 = vrot.slane %v1065_v22, %v2056_v41 }
 0x21b   :  { %v747_v32 = vmax.f32 %v653_v24, 0.0  ;;  %v657_v58 = vpop.f32.mrb[15].mxu1  ;;  %v1074_v24 = vrot.slane %v1065_v22, %v2064_v39 }
 0x21c   :  { %v748_v35 = vmax.f32 %v655_v2, 0.0 }
 0x21d   :  { %v823_v40 = vmul.f32 %v784_v26, %v747_v32  ;;  %v1486_v26 = vld [vmem:[%s2175_s11] sm:$0x3] }
 0x21e   :  { %v824_v43 = vmul.f32 %v788_v51, %v748_v35  ;;  %v1491_v29 = vrot.slane %v1486_v26, %v2056_v41  ;;  %v1495_v32 = vrot.slane %v1486_v26, %v2064_v39 }
 0x21f   :  { %v840_v50 = vsel %vm456_vm4, %v823_v40, 0.0 }
 0x220   :  { %v841_v44 = vadd.f32 %v840_v50, %v839_v28  ;;  %v842_v53 = vsel %vm456_vm4, %v824_v43, 0.0  ;;  %v734_v55 = vpop.f32.mrb[16].mxu1 }
 0x221   :  { %v735_v59 = vadd.f32 %v734_v55, %v374_v3  ;;  %v736_v61 = vpop.f32.mrb[17].mxu1 }
 0x222   :  { %v843_v62 = vadd.f32 %v842_v53, %v841_v44  ;;  %v737_v63 = vadd.f32 %v736_v61, %v378_v45  ;;  %v738_v54 = vpop.f32.mrb[18].mxu1  ;;  %v1616_v44 = vld [vmem:[#allocation2] ss:$0 sm:$0xff] }
 0x223   :  { %v751_v0 = vmax.f32 %v735_v59, 0.0  ;;  %v739_v36 = vpop.f32.mrb[19].mxu1 }
 0x224   :  { %v752_v42 = vmax.f32 %v737_v63, 0.0  ;;  %v845_v46 = vadd.f32 %v844_v33, %v843_v62 }
 0x225   :  { %v827_v47 = vmul.f32 %v800_v60, %v751_v0 }
 0x226   :  { %v828_v4 = vmul.f32 %v804_v1, %v752_v42  ;;  %v847_v5 = vadd.f32 %v846_v49, %v845_v46 }
 0x227   :  { %v848_v34 = vsel %vm456_vm4, %v827_v47, 0.0 }
 0x228   :  { %v987_v6 = vpop.f32.mrb[20].mxu1  ;;  %v849_v9 = vadd.f32 %v848_v34, %v847_v5  ;;  %v850_v10 = vsel %vm456_vm4, %v828_v4, 0.0 }
 0x229   :  { %v988_v11 = vadd.f32 %v987_v6, %v869_v25  ;;  %v989_v12 = vpop.f32.mrb[21].mxu1 }
 0x22a   :  { %v990_v13 = vadd.f32 %v989_v12, %v873_v52  ;;  %v991_v14 = vpop.f32.mrb[22].mxu1  ;;  %v851_v15 = vadd.f32 %v850_v10, %v849_v9 }
 0x22b   :  { %v996_v16 = vmax.f32 %v988_v11, 0.0  ;;  %v992_v57 = vpop.f32.mrb[23].mxu1 }
 0x22c   :  { %v997_v18 = vmax.f32 %v990_v13, 0.0  ;;  %852 = vadd.xlane.f32.xlu0 %v851_v15 }
 0x22d   :  { %v1000_v7 = vpack.c.bf16 %v996_v16, %v996_v16 }
 0x22e   :  { %v1001_v19 = vpack.c.bf16 %v997_v18, %v997_v18 }
 0x230   :  { %1615 = vmatprep.mubr.msk.bf16.mxu0 %vm1392_vm8, %v1001_v19 }
 0x231   :  { %1476 = vmatmul.mubr.bf16.vlgmr.msra.gmra.mrb[24].mxu0 %v1000_v7 }
 0x2b9   :  { %v853_v50 = vpop.xlane.xlu0 %852 }
 0x2e4   :  { %v1436_v8 = vpop.f32.mrb[24].mxu1 }
 0x2e5   :  { %v1438_v17 = vpop.f32.mrb[25].mxu1  ;;  %v1437_v27 = vadd.f32 %v1436_v8, %v1070_v23 }
 0x2e6   :  { %v1440_v20 = vpop.f32.mrb[26].mxu1  ;;  %v1439_v28 = vadd.f32 %v1438_v17, %v1074_v24 }
 0x2e7   :  { %v1441_v21 = vpop.f32.mrb[27].mxu1 }
 0x304   :  { %v1477_v2 = vpop.f32.mrb[24].mxu0 }
 0x305   :  { %v1478_v51 = vadd.f32 %v1477_v2, %v1437_v27  ;;  %v1479_v30 = vpop.f32.mrb[25].mxu0 }
 0x306   :  { %v1480_v31 = vadd.f32 %v1479_v30, %v1439_v28  ;;  %v1481_v58 = vpop.f32.mrb[26].mxu0 }
 0x307   :  { %v1484_v35 = vmax.f32 %v1478_v51, 0.0  ;;  %v1482_v37 = vpop.f32.mrb[27].mxu0 }
 0x308   :  { %v1485_v38 = vmax.f32 %v1480_v31, 0.0 }
 0x309   :  { %v1498_v40 = vmul.f32 %v1491_v29, %v1484_v35 }
 0x30a   :  { %v1499_v3 = vmul.f32 %v1495_v32, %v1485_v38 }
 0x30b   :  { %v1500_v43 = vsel %vm456_vm4, %v1498_v40, 0.0 }
 0x30c   :  { %v1502_v45 = vsel %vm1501_vm9, %v1499_v3, 0.0 }
 0x30d   :  { %v1503_v48 = vadd.f32 %v1502_v45, %v1500_v43 }
 0x30f   :  { %1504 = vadd.xlane.f32.xlu0 %v1503_v48 }
 0x39c   :  { %v1505_v53 = vpop.xlane.xlu0 %1504 }
 0x39d   :  { %v1506_v41 = vadd.f32 %v1505_v53, %v853_v50 }
 0x39f   :  { %v1514_v55 = vadd.f32 %v1616_v44, %v1506_v41 }
 0x3a1   :  { %1516 = vst.msk [vmem:[%s2177_s13] sm:$0x3] %vm1515_vm10, %v1514_v55 }
 0x3a2   :  { %1521 = vsyncpa [#allocation4], 1 }

</bundles_post_ra>
